<compile_context>
chip_gen: v6e
topology: v6e:2x2x1
jax: 0.10.0
libtpu: 0.0.40
codegen_flags: <defaults>
</compile_context>

<pallas_src>
import functools

import jax
import jax.numpy as jnp
from jax.experimental import pallas as pl
from jax.experimental.pallas import tpu as pltpu


def _round_up(x, m):
    return (x + m - 1) // m * m


def _cdiv(a, b):
    return (a + b - 1) // b


def mlp_critic_kernel(obs_ref, w1_ref, b1_ref, w2_ref, b2_ref, w3_ref, b3_ref,
                      out_ref, *, chunk):
    """One batch tile, processed in `chunk`-row sub-blocks to bound vreg pressure."""
    w1 = w1_ref[...]                       # (H1, D)   compute dtype
    b1 = b1_ref[...]                       # (H1, 1)   f32
    w2 = w2_ref[...]                       # (H2, H1)  compute dtype
    b2 = b2_ref[...]                       # (H2, 1)   f32
    w3 = w3_ref[...]                       # (H2, 1)   f32
    b3 = b3_ref[0, 0]                      # scalar (SMEM)

    n_chunks = obs_ref.shape[0] // chunk

    def body(c, carry):
        start = pl.multiple_of(c * chunk, chunk)
        x = obs_ref[pl.ds(start, chunk), :]            # (chunk, D) streamed f32
        xc = x.astype(w1.dtype)                        # in-kernel cast (VPU slack)
        # Layer 1 on the MXU, transposed: contract over D -> (H1, chunk).
        a1 = jax.lax.dot_general(
            w1, xc, dimension_numbers=(((1,), (1,)), ((), ())),
            preferred_element_type=jnp.float32)
        h1 = jnp.tanh(a1 + b1)                         # (H1, chunk) f32 (EUP)
        # Layer 2 on the MXU: (H2, H1) @ (H1, chunk) -> (H2, chunk), f32 acc.
        a2 = jnp.dot(w2, h1.astype(w2.dtype),
                     preferred_element_type=jnp.float32)
        h2 = jnp.tanh(a2 + b2)                         # (H2, chunk) f32
        # Layer 3 (N=1) as VPU multiply + sublane reduce -> lane-major (1, chunk),
        # so the store is a wide unmasked vst instead of a masked column.
        v = jnp.sum(h2 * w3, axis=0, keepdims=True) + b3
        out_ref[:, pl.ds(start, chunk)] = v.astype(out_ref.dtype)
        return carry

    jax.lax.fori_loop(0, n_chunks, body, 0, unroll=True)


def _choose_tiling(B, block_batch):
    """Batch tile (multiple of 128) and tile count (even when > 1, for v7x)."""
    tb_cap = max(_round_up(block_batch, 128), 128)
    if B <= 128:
        return 128, 1
    nt = max(2, _cdiv(B, tb_cap))          # >= 2 tiles so v7x megacore engages
    if nt % 2:
        nt += 1                            # balanced split across the two TCs
    tb = _round_up(_cdiv(B, nt), 128)
    nt = _cdiv(B, tb)
    return tb, nt


def mlp_critic_forward(obs, params, *, block_batch=2048,
                       compute_dtype=jnp.float32):
    """Runs the fused Pallas kernel; returns value estimates of shape (B,)."""
    w1, b1, w2, b2, w3, b3 = params                     # PyTorch layout: W (out, in)
    B, D = obs.shape
    H1 = w1.shape[0]
    H2 = w2.shape[0]

    TB, num_tiles = _choose_tiling(B, block_batch)
    B_out = num_tiles * TB                              # output lanes only are padded

    # Inner chunk keeps (H, chunk) f32 activations small enough to avoid spills.
    if TB <= 512:
        chunk = TB
    elif TB % 512 == 0:
        chunk = 512
    elif TB % 256 == 0:
        chunk = 256
    else:
        chunk = 128

    # Weights are tiny and fetched exactly once -> cast them wrapper-side.
    # obs is streamed untouched (no extra HBM pad/cast passes).
    w1_c = w1.astype(compute_dtype)                     # (H1, D)
    w2_c = w2.astype(compute_dtype)                     # (H2, H1)
    b1_c = b1.reshape(H1, 1).astype(jnp.float32)
    b2_c = b2.reshape(H2, 1).astype(jnp.float32)
    w3_c = w3.reshape(H2, 1).astype(jnp.float32)
    b3_c = b3.reshape(1, 1).astype(jnp.float32)         # scalar -> SMEM

    lane, sub = 128, 8
    w_isz = jnp.dtype(compute_dtype).itemsize
    obs_isz = jnp.dtype(obs.dtype).itemsize
    vmem_bytes = (
        2 * TB * _round_up(D, lane) * obs_isz           # obs tiles (2 pipeline bufs)
        + 2 * sub * TB * 4                              # (1, TB) out tiles
        + 2 * (_round_up(H1, sub) * _round_up(D, lane)
               + _round_up(H2, sub) * _round_up(H1, lane)) * w_isz   # W1, W2
        + 2 * 3 * sub * lane * 4                        # b1, b2, w3 columns
        + 8 * _round_up(max(H1, H2), sub) * chunk * 4   # per-chunk live activations
    )
    vmem_bytes = int(min(max(2 * vmem_bytes, 4 << 20), 32 << 20))

    cost = pl.CostEstimate(
        flops=2 * B * (D * H1 + H1 * H2 + H2),
        transcendentals=B * (H1 + H2),
        bytes_accessed=int(obs.size * obs_isz + B_out * 4
                           + (w1.size + w2.size) * w_isz
                           + (H1 + H2 + H2 + 1) * 4),
    )

    resident = lambda shape: pl.BlockSpec(shape, lambda i: (0, 0))

    out = pl.pallas_call(
        functools.partial(mlp_critic_kernel, chunk=chunk),
        out_shape=jax.ShapeDtypeStruct((1, B_out), jnp.float32),
        grid=(num_tiles,),
        in_specs=[
            pl.BlockSpec((TB, D), lambda i: (i, 0)),    # obs: streamed row tiles
            resident((H1, D)),                          # W1 (VMEM resident)
            resident((H1, 1)),                          # b1
            resident((H2, H1)),                         # W2
            resident((H2, 1)),                          # b2
            resident((H2, 1)),                          # w3 (as a column)
            pl.BlockSpec(memory_space=pltpu.MemorySpace.SMEM),   # b3 scalar
        ],
        out_specs=pl.BlockSpec((1, TB), lambda i: (0, i)),   # lane-dense output row
        compiler_params=pltpu.CompilerParams(
            dimension_semantics=("parallel",),          # megacore on v7x
            vmem_limit_bytes=vmem_bytes,
        ),
        cost_estimate=cost,
    )(obs, w1_c, b1_c, w2_c, b2_c, w3_c, b3_c)

    return out[0, :B]                                   # squeeze(-1) -> (B,)


def init_mlp_critic_params(key, obs_dim, hidden_sizes):
    """Deterministic synthetic params, PyTorch nn.Linear layout: W (out, in), b (out,)."""
    sizes = [obs_dim] + list(hidden_sizes) + [1]
    params = []
    for j in range(len(sizes) - 1):
        fan_in, fan_out = sizes[j], sizes[j + 1]
        key, kw, kb = jax.random.split(key, 3)
        bound = 1.0 / jnp.sqrt(fan_in)
        w = jax.random.uniform(kw, (fan_out, fan_in), jnp.float32, -bound, bound)
        b = jax.random.uniform(kb, (fan_out,), jnp.float32, -bound, bound)
        params += [w, b]
    return tuple(params)


def mlp_critic_reference(obs, params):
    """Pure-JAX reference (mirrors the PyTorch forward) for correctness check."""
    w1, b1, w2, b2, w3, b3 = params
    h1 = jnp.tanh(obs @ w1.T + b1)
    h2 = jnp.tanh(h1 @ w2.T + b2)
    v = h2 @ w3.T + b3
    return jnp.squeeze(v, -1)


if __name__ == "__main__":
    key = jax.random.PRNGKey(0)
    batch, obs_dim, hidden_sizes = 8, 16, (32, 32)      # activation = tanh

    key, k_obs, k_big = jax.random.split(key, 3)
    obs = jax.random.normal(k_obs, (batch, obs_dim), jnp.float32)
    params = init_mlp_critic_params(key, obs_dim, hidden_sizes)

    # Tiny batch, single tile, f32.
    v_kernel = mlp_critic_forward(obs, params)
    jax.block_until_ready(v_kernel)
    v_ref = mlp_critic_reference(obs, params)
    assert v_kernel.shape == (batch,)
    assert jnp.allclose(v_kernel, v_ref, atol=1e-4, rtol=1e-4)

    # Ragged batch, many small tiles: exercises partial input blocks (no
    # wrapper-side pad), resident weights, even tile count.
    big_batch = 2000
    obs_big = jax.random.normal(k_big, (big_batch, obs_dim), jnp.float32)
    v_big = mlp_critic_forward(obs_big, params, block_batch=256)
    jax.block_until_ready(v_big)
    v_big_ref = mlp_critic_reference(obs_big, params)
    assert v_big.shape == (big_batch,)
    assert jnp.allclose(v_big, v_big_ref, atol=1e-4, rtol=1e-4)

    # Default large-tile path: TB=1024, 2 tiles, inner 512-lane chunk loop.
    v_big2 = mlp_critic_forward(obs_big, params)
    jax.block_until_ready(v_big2)
    assert jnp.allclose(v_big2, v_big_ref, atol=1e-4, rtol=1e-4)

    # bf16 MXU-operand path (obs streamed f32, cast in-kernel; f32 tanh/accum).
    v_bf16 = mlp_critic_forward(obs_big, params, compute_dtype=jnp.bfloat16)
    jax.block_until_ready(v_bf16)
    assert jnp.allclose(v_bf16, v_big_ref, atol=5e-2, rtol=5e-2)

    print("KERNEL_OK")
</pallas_src>

<mosaic_0001>
module attributes {stable_mosaic.version = 11 : i64} {
  func.func @mlp_critic_kernel(%arg0: i32, %arg1: memref<128x16xf32, #tpu.memory_space<vmem>>, %arg2: memref<32x16xf32, #tpu.memory_space<vmem>>, %arg3: memref<32x1xf32, #tpu.memory_space<vmem>>, %arg4: memref<32x32xf32, #tpu.memory_space<vmem>>, %arg5: memref<32x1xf32, #tpu.memory_space<vmem>>, %arg6: memref<32x1xf32, #tpu.memory_space<vmem>>, %arg7: memref<1x1xf32, #tpu.memory_space<smem>>, %arg8: memref<1x128xf32, #tpu.memory_space<vmem>>) attributes {dimension_semantics = [#tpu.dimension_semantics<parallel>], iteration_bounds = array<i64: 1>, scalar_prefetch = 0 : i64, scratch_operands = 0 : i64, tpu.core_type = #tpu.core_type<tc>, window_params = [{transform_indices = @transform_0, window_bounds = array<i64: 128, 16>}, {pipeline_mode = #tpu.pipeline_mode<synchronous>, transform_indices = @transform_1, window_bounds = array<i64: 32, 16>}, {pipeline_mode = #tpu.pipeline_mode<synchronous>, transform_indices = @transform_2, window_bounds = array<i64: 32, 1>}, {pipeline_mode = #tpu.pipeline_mode<synchronous>, transform_indices = @transform_3, window_bounds = array<i64: 32, 32>}, {pipeline_mode = #tpu.pipeline_mode<synchronous>, transform_indices = @transform_4, window_bounds = array<i64: 32, 1>}, {pipeline_mode = #tpu.pipeline_mode<synchronous>, transform_indices = @transform_5, window_bounds = array<i64: 32, 1>}, {transform_indices = @transform_6, window_bounds = array<i64: 1, 1>}, {transform_indices = @transform_7, window_bounds = array<i64: 1, 128>}]} {
    %c0 = arith.constant 0 : index
    %c0_0 = arith.constant 0 : index
    %0 = vector.load %arg2[%c0, %c0_0] : memref<32x16xf32, #tpu.memory_space<vmem>>, vector<32x16xf32>
    %c0_1 = arith.constant 0 : index
    %c0_2 = arith.constant 0 : index
    %1 = vector.load %arg3[%c0_1, %c0_2] : memref<32x1xf32, #tpu.memory_space<vmem>>, vector<32x1xf32>
    %c0_3 = arith.constant 0 : index
    %c0_4 = arith.constant 0 : index
    %2 = vector.load %arg4[%c0_3, %c0_4] : memref<32x32xf32, #tpu.memory_space<vmem>>, vector<32x32xf32>
    %c0_5 = arith.constant 0 : index
    %c0_6 = arith.constant 0 : index
    %3 = vector.load %arg5[%c0_5, %c0_6] : memref<32x1xf32, #tpu.memory_space<vmem>>, vector<32x1xf32>
    %c0_7 = arith.constant 0 : index
    %c0_8 = arith.constant 0 : index
    %4 = vector.load %arg6[%c0_7, %c0_8] : memref<32x1xf32, #tpu.memory_space<vmem>>, vector<32x1xf32>
    %c0_9 = arith.constant 0 : index
    %c0_10 = arith.constant 0 : index
    %5 = memref.load %arg7[%c0_9, %c0_10] : memref<1x1xf32, #tpu.memory_space<smem>>
    %c0_i32 = arith.constant 0 : i32
    %c128_i32 = arith.constant 128 : i32
    %6 = arith.muli %c0_i32, %c128_i32 : i32
    %7 = tpu.assume_multiple %6, 128 : i32
    %8 = arith.index_cast %7 : i32 to index
    %c0_11 = arith.constant 0 : index
    %9 = vector.load %arg1[%8, %c0_11] : memref<128x16xf32, #tpu.memory_space<vmem>>, vector<128x16xf32>
    %cst = arith.constant dense<0.000000e+00> : vector<32x128xf32>
    %10 = tpu.matmul %0, %9, %cst {dimension_numbers = #tpu.dot_dimension_numbers<[1], [1], [0], [0], [0, 0, 1, 0], [], []>} : vector<32x16xf32>, vector<128x16xf32>, vector<32x128xf32> -> vector<32x128xf32>
    %11 = vector.broadcast %1 : vector<32x1xf32> to vector<32x128xf32>
    %12 = arith.addf %10, %11 : vector<32x128xf32>
    %13 = math.tanh %12 : vector<32x128xf32>
    %cst_12 = arith.constant dense<0.000000e+00> : vector<32x128xf32>
    %14 = tpu.matmul %2, %13, %cst_12 {dimension_numbers = #tpu.dot_dimension_numbers<[1], [0], [0], [1], [0, 0, 1, 1], [], []>} : vector<32x32xf32>, vector<32x128xf32>, vector<32x128xf32> -> vector<32x128xf32>
    %15 = vector.broadcast %3 : vector<32x1xf32> to vector<32x128xf32>
    %16 = arith.addf %14, %15 : vector<32x128xf32>
    %17 = math.tanh %16 : vector<32x128xf32>
    %18 = vector.broadcast %4 : vector<32x1xf32> to vector<32x128xf32>
    %19 = arith.mulf %17, %18 : vector<32x128xf32>
    %cst_13 = arith.constant dense<0.000000e+00> : vector<128xf32>
    %20 = vector.multi_reduction <add>, %19, %cst_13 [0] : vector<32x128xf32> to vector<128xf32>
    %21 = vector.shape_cast %20 : vector<128xf32> to vector<1x128xf32>
    %22 = vector.broadcast %5 : f32 to vector<1x128xf32>
    %23 = arith.addf %21, %22 : vector<1x128xf32>
    %c0_14 = arith.constant 0 : index
    %24 = arith.index_cast %7 : i32 to index
    %25 = vector.load %arg8[%c0_14, %24] : memref<1x128xf32, #tpu.memory_space<vmem>>, vector<1x128xf32>
    tpu.vector_store %arg8[%c0_14, %24], %23 {strides = array<i32>} : memref<1x128xf32, #tpu.memory_space<vmem>>, vector<1x128xf32>,
    %c1_i32 = arith.constant 1 : i32
    return
  }
  func.func @transform_0(%arg0: i32) -> (i32, i32) {
    %c0_i32 = arith.constant 0 : i32
    %c0_i32_0 = arith.constant 0 : i32
    return %arg0, %c0_i32 : i32, i32
  }
  func.func @transform_1(%arg0: i32) -> (i32, i32) {
    %c0_i32 = arith.constant 0 : i32
    %c0_i32_0 = arith.constant 0 : i32
    %c0_i32_1 = arith.constant 0 : i32
    return %c0_i32, %c0_i32_0 : i32, i32
  }
  func.func @transform_2(%arg0: i32) -> (i32, i32) {
    %c0_i32 = arith.constant 0 : i32
    %c0_i32_0 = arith.constant 0 : i32
    %c0_i32_1 = arith.constant 0 : i32
    return %c0_i32, %c0_i32_0 : i32, i32
  }
  func.func @transform_3(%arg0: i32) -> (i32, i32) {
    %c0_i32 = arith.constant 0 : i32
    %c0_i32_0 = arith.constant 0 : i32
    %c0_i32_1 = arith.constant 0 : i32
    return %c0_i32, %c0_i32_0 : i32, i32
  }
  func.func @transform_4(%arg0: i32) -> (i32, i32) {
    %c0_i32 = arith.constant 0 : i32
    %c0_i32_0 = arith.constant 0 : i32
    %c0_i32_1 = arith.constant 0 : i32
    return %c0_i32, %c0_i32_0 : i32, i32
  }
  func.func @transform_5(%arg0: i32) -> (i32, i32) {
    %c0_i32 = arith.constant 0 : i32
    %c0_i32_0 = arith.constant 0 : i32
    %c0_i32_1 = arith.constant 0 : i32
    return %c0_i32, %c0_i32_0 : i32, i32
  }
  func.func @transform_6(%arg0: i32) -> (i32, i32) {
    %c0_i32 = arith.constant 0 : i32
    %c0_i32_0 = arith.constant 0 : i32
    %c0_i32_1 = arith.constant 0 : i32
    return %c0_i32, %c0_i32_0 : i32, i32
  }
  func.func @transform_7(%arg0: i32) -> (i32, i32) {
    %c0_i32 = arith.constant 0 : i32
    %c0_i32_0 = arith.constant 0 : i32
    return %c0_i32, %arg0 : i32, i32
  }
}

</mosaic_0001>

<bundles_post_ra>
// kernel: tpu_custom_call.1
= control target key start
LH: loop header
LB: loop body
LE: loop exit
PB: predicated region body
PF: predicated region fallthrough
CT: control target
= control target key end

     0   :  { %vm85_vm0 = vcmask 130048   ;;  %v553_v2 = vmov 0   ;;  %s749_s0 = inlined_call_operand.vmem [shape: f32[8,16], index: 0, kind: input, shape index: {}]   ;;  %s750_s1 = inlined_call_operand.vmem [shape: f32[32,16], index: 1, kind: input, shape index: {}]   ;;  %s751_s2 = inlined_call_operand.vmem [shape: f32[32,1], index: 2, kind: input, shape index: {}]   ;;  %s752_s3 = inlined_call_operand.vmem [shape: f32[32,32], index: 3, kind: input, shape index: {}]   ;;  %s753_s4 = inlined_call_operand.vmem [shape: f32[32,1], index: 4, kind: input, shape index: {}]   ;;  %s754_s5 = inlined_call_operand.vmem [shape: f32[32,1], index: 5, kind: input, shape index: {}]   ;;  %s755_s6 = inlined_call_operand.<no memory space> [shape: f32[1,1], index: 6, kind: input, shape index: {}]   ;;  %s756_s7 = inlined_call_operand.hbm [shape: f32[1,128], index: 7, kind: output, shape index: {}]  }
   0x1   :  { %v64_v0 = vld [vmem:[%s749_s0 + $0x78] sm:$0xff]  ;;  %v63_v1 = vld [vmem:[%s749_s0 + $0x70] sm:$0xff]  ;;  %513 = vset.pattern.permute.xlu0 %v553_v2  ;;  %514 = vset.pattern.permute.xlu1 %v553_v2  ;;  %v62_v3 = vld [vmem:[%s749_s0 + $0x68] sm:$0xff] }
   0x2   :  { %459 = vmatprep.subr.msk.mxu0 %vm85_vm0, %v64_v0  ;;  %v28_v4 = vld [vmem:[%s750_s1] sm:$0xff]  ;;  %v35_v5 = vld [vmem:[%s751_s2 + $0x18] sm:$0xff]  ;;  %v33_v6 = vld [vmem:[%s751_s2 + $0x8] sm:$0xff] }
   0x3   :  { %460 = vmatpush3.xpose.msk.msra.mxu0 %vm85_vm0, %v64_v0  ;;  %491 = vmatprep.mubr.msk.f32.mxu0 %vm85_vm0, %v28_v4  ;;  %v61_v7 = vld [vmem:[%s749_s0 + $0x60] sm:$0xff]  ;;  %v34_v8 = vld [vmem:[%s751_s2 + $0x10] sm:$0xff] }
   0x4   :  { %461 = vmatprep.subr.msk.mxu0 %vm85_vm0, %v63_v1  ;;  %82 = vperm.xlu0 %513, %v35_v5   ;;  %v32_v9 = vld [vmem:[%s751_s2] sm:$0xff] }
   0x5   :  { %72 = vperm.xlu1 %514, %v33_v6  }
   0x7   :  { %462 = vmatpush3.xpose.msk.msra.mxu0 %vm85_vm0, %v63_v1 }
   0x8   :  { %463 = vmatprep.subr.msk.mxu0 %vm85_vm0, %v62_v3 }
   0xb   :  { %464 = vmatpush3.xpose.msk.msra.mxu0 %vm85_vm0, %v62_v3 }
   0xc   :  { %13 = vsyncpa [#allocation4], 0  ;;  %465 = vmatprep.subr.msk.mxu0 %vm85_vm0, %v61_v7  ;;  %77 = vperm.xlu0 %513, %v34_v8   ;;  %v60_v10 = vld [vmem:[%s749_s0 + $0x58] sm:$0xff]  ;;  %v40_v11 = vld [vmem:[%s753_s4] sm:$0xff]  ;;  %vm255_vm1 = vcmask 261120   ;;  %s554_s21 = smov [#allocation3]  }
   0xd   :  { %67 = vperm.xlu1 %514, %v32_v9   ;;  %v41_v12 = vld [vmem:[%s753_s4 + $0x8] sm:$0xff]  ;;  %v59_v13 = vld [vmem:[%s749_s0 + $0x50] sm:$0xff]  ;;  %v43_v15 = vld [vmem:[%s753_s4 + $0x18] sm:$0xff] }
   0xe   :  { %v42_v14 = vld [vmem:[%s753_s4 + $0x10] sm:$0xff]  ;;  %v58_v16 = vld [vmem:[%s749_s0 + $0x48] sm:$0xff]  ;;  %v44_v17 = vld [vmem:[%s754_s5] sm:$0xff] }
   0xf   :  { %466 = vmatpush3.xpose.msk.msra.mxu0 %vm85_vm0, %v61_v7  ;;  %v45_v18 = vld [vmem:[%s754_s5 + $0x8] sm:$0xff]  ;;  %v57_v19 = vld [vmem:[%s749_s0 + $0x40] sm:$0xff]  ;;  %v46_v20 = vld [vmem:[%s754_s5 + $0x10] sm:$0xff] }
  0x10   :  { %467 = vmatprep.subr.msk.mxu0 %vm85_vm0, %v60_v10  ;;  %237 = vperm.xlu0 %513, %v40_v11   ;;  %v47_v21 = vld [vmem:[%s754_s5 + $0x18] sm:$0xff]  ;;  %v55_v23 = vld [vmem:[%s749_s0 + $0x30] sm:$0xff]  ;;  %v54_v24 = vld [vmem:[%s749_s0 + $0x28] sm:$0xff]  ;;  %s399_s5 = sshll.u32 %s554_s21, 4  ;;  %s400_s5 = int_to_ptr.vmem [resolvable:$true] %s399_s5 }
  0x11   :  { %242 = vperm.xlu1 %514, %v41_v12   ;;  %v56_v22 = vld [vmem:[%s749_s0 + $0x38] sm:$0xff]  ;;  %v53_v25 = vld [vmem:[%s749_s0 + $0x20] sm:$0xff]  ;;  %v51_v27 = vld [vmem:[%s749_s0 + $0x10] sm:$0xff]  ;;  %s531_s22 = scalar_lea.vmem %s400_s5, 16  ;;  %s535_s23 = scalar_lea.vmem %s400_s5, 32 }
  0x12   :  { %v52_v26 = vld [vmem:[%s749_s0 + $0x18] sm:$0xff]  ;;  %v50_v28 = vld [vmem:[%s749_s0 + $0x8] sm:$0xff]  ;;  %v49_v29 = vld [vmem:[%s749_s0] sm:$0xff]  ;;  %p532_p0 = scmp.ne.s32.totalorder %s400_s5, %s531_s22  ;;  %p536_p1 = scmp.lt.s32.totalorder %s400_s5, %s400_s5 }
  0x13   :  { %468 = vmatpush3.xpose.msk.msra.mxu0 %vm85_vm0, %v60_v10  ;;  %v29_v30 = vld [vmem:[%s750_s1 + $0x8] sm:$0xff]  ;;  %v30_v31 = vld [vmem:[%s750_s1 + $0x10] sm:$0xff]  ;;  %v31_v32 = vld [vmem:[%s750_s1 + $0x18] sm:$0xff]  ;;  %p537_p2 = scmp.lt.s32.totalorder %s535_s23, %s531_s22 }
  0x14   :  { %469 = vmatprep.subr.msk.mxu0 %vm85_vm0, %v59_v13  ;;  %247 = vperm.xlu0 %513, %v42_v14   ;;  %v36_v33 = vld [vmem:[%s752_s3] sm:$0xff]  ;;  %v37_v50 = vld [vmem:[%s752_s3 + $0x8] sm:$0xff]  ;;  %v38_v51 = vld [vmem:[%s752_s3 + $0x10] sm:$0xff] }
  0x15   :  { %252 = vperm.xlu1 %514, %v43_v15   ;;  %505 = vmatprep.mubr.msk.f32.mxu1 %vm255_vm1, %v36_v33  ;;  %v39_v52 = vld [vmem:[%s752_s3 + $0x18] sm:$0xff]  ;;  %p538_p3 = por %p537_p2, %p536_p1 }
  0x17   :  { %470 = vmatpush3.xpose.msk.msra.mxu0 %vm85_vm0, %v59_v13  ;;  %p539_p4 = pnand %p538_p3, %p532_p0 }
  0x18   :  { %471 = vmatprep.subr.msk.mxu0 %vm85_vm0, %v58_v16  ;;  %359 = vperm.xlu0 %513, %v44_v17  }
  0x19   :  { %364 = vperm.xlu1 %514, %v45_v18  }
  0x1b   :  { %472 = vmatpush3.xpose.msk.msra.mxu0 %vm85_vm0, %v58_v16 }
  0x1c   :  { %473 = vmatprep.subr.msk.mxu0 %vm85_vm0, %v57_v19  ;;  %369 = vperm.xlu0 %513, %v46_v20  }
  0x1d   :  { %374 = vperm.xlu1 %514, %v47_v21   ;;  %v390_v21 = vstv %s755_s6 }
  0x1f   :  { %474 = vmatpush3.xpose.msk.msra.mxu0 %vm85_vm0, %v57_v19 }
  0x20   :  { %475 = vmatprep.subr.msk.mxu0 %vm85_vm0, %v56_v22 }
  0x23   :  { %476 = vmatpush3.xpose.msk.msra.mxu0 %vm85_vm0, %v56_v22 }
  0x24   :  { %477 = vmatprep.subr.msk.mxu0 %vm85_vm0, %v55_v23 }
  0x27   :  { %478 = vmatpush3.xpose.msk.msra.mxu0 %vm85_vm0, %v55_v23 }
  0x28   :  { %479 = vmatprep.subr.msk.mxu0 %vm85_vm0, %v54_v24 }
  0x2b   :  { %480 = vmatpush3.xpose.msk.msra.mxu0 %vm85_vm0, %v54_v24 }
  0x2c   :  { %481 = vmatprep.subr.msk.mxu0 %vm85_vm0, %v53_v25 }
  0x2f   :  { %482 = vmatpush3.xpose.msk.msra.mxu0 %vm85_vm0, %v53_v25 }
  0x30   :  { %483 = vmatprep.subr.msk.mxu0 %vm85_vm0, %v52_v26 }
  0x33   :  { %484 = vmatpush3.xpose.msk.msra.mxu0 %vm85_vm0, %v52_v26 }
  0x34   :  { %485 = vmatprep.subr.msk.mxu0 %vm85_vm0, %v51_v27 }
  0x37   :  { %486 = vmatpush3.xpose.msk.msra.mxu0 %vm85_vm0, %v51_v27 }
  0x38   :  { %487 = vmatprep.subr.msk.mxu0 %vm85_vm0, %v50_v28 }
  0x3b   :  { %488 = vmatpush3.xpose.msk.msra.mxu0 %vm85_vm0, %v50_v28 }
  0x3c   :  { %489 = vmatprep.subr.msk.mxu0 %vm85_vm0, %v49_v29 }
  0x3f   :  { %490 = vmatpush3.xpose.msk.msra.mxu0 %vm85_vm0, %v49_v29 }
  0x42   :  { %492 = vmatmul.mubr.msk.f32.vlgmr.msra.gmra.mxu0 %vm85_vm0, %v29_v30 }
  0x43   :  { %494 = vmatprep.mubr.msk.f32.mxu0 %vm85_vm0, %v30_v31 }
  0x46   :  { %495 = vmatmul.mubr.msk.f32.gmra.mxu0 %vm85_vm0, %v31_v32 }
  0x7f   :  { %v83_v34 = vpop.permute.xlu0 %82 }
  0x80   :  { %v73_v36 = vpop.permute.xlu1 %72 }
  0x87   :  { %v78_v40 = vpop.permute.xlu0 %77 }
  0x88   :  { %v68_v44 = vpop.permute.xlu1 %67 }
  0x8b   :  { %v238_v54 = vpop.permute.xlu0 %237 }
  0x8c   :  { %v243_v53 = vpop.permute.xlu1 %242 }
  0x8f   :  { %v248_v62 = vpop.permute.xlu0 %247 }
  0x90   :  { %v253_v59 = vpop.permute.xlu1 %252 }
  0x93   :  { %v360_v1 = vpop.permute.xlu0 %359 }
  0x94   :  { %v365_v4 = vpop.permute.xlu1 %364 }
  0x97   :  { %v370_v9 = vpop.permute.xlu0 %369 }
  0x98   :  { %v375_v12 = vpop.permute.xlu1 %374 }
 0x102   :  { %v493_v35 = vpop.f32.mrf.mxu0 }
 0x103   :  { %v218_v42 = vadd.f32 %v493_v35, %v73_v36 }
 0x104   :  { %v212_v37 = vpop.f32.mrf.mxu0 }
 0x105   :  { %v213_v45 = vadd.f32 %v212_v37, %v68_v44 }
 0x106   :  { %v496_v38 = vpop.f32.mrf.mxu0 }
 0x107   :  { %v228_v39 = vadd.f32 %v496_v38, %v83_v34 }
 0x108   :  { %v222_v41 = vpop.f32.mrf.mxu0 }
 0x109   :  { %515 = vtanh.f32 %v228_v39  ;;  %v223_v43 = vadd.f32 %v222_v41, %v78_v40 }
 0x10b   :  { %517 = vtanh.f32 %v223_v43 }
 0x10c   :  { %519 = vtanh.f32 %v218_v42 }
 0x10d   :  { %521 = vtanh.f32 %v213_v45 }
 0x116   :  { %v516_v46 = vpop.eup %515 }
 0x117   :  { %497 = vmatprep.subr.mxu1 %v516_v46 }
 0x118   :  { %v518_v47 = vpop.eup %517  ;;  %498 = vmatpush3.msra.mxu1 %v516_v46 }
 0x119   :  { %499 = vmatprep.subr.mxu1 %v518_v47  ;;  %v520_v48 = vpop.eup %519 }
 0x11a   :  { %500 = vmatpush3.msra.mxu1 %v518_v47  ;;  %v522_v49 = vpop.eup %521 }
 0x11b   :  { %501 = vmatprep.subr.mxu1 %v520_v48 }
 0x11c   :  { %502 = vmatpush3.msra.mxu1 %v520_v48 }
 0x11d   :  { %503 = vmatprep.subr.mxu1 %v522_v49 }
 0x11e   :  { %504 = vmatpush3.msra.mxu1 %v522_v49 }
 0x11f   :  { %506 = vmatmul.mubr.msk.f32.vlgmr.msra.gmra.mxu1 %vm255_vm1, %v37_v50 }
 0x120   :  { %508 = vmatprep.mubr.msk.f32.mxu1 %vm255_vm1, %v38_v51 }
 0x123   :  { %509 = vmatmul.mubr.msk.f32.gmra.mxu1 %vm255_vm1, %v39_v52 }
 0x1df   :  { %v507_v55 = vpop.f32.mrf.mxu1 }
 0x1e0   :  { %v340_v56 = vadd.f32 %v507_v55, %v243_v53 }
 0x1e1   :  { %v334_v57 = vpop.f32.mrf.mxu1 }
 0x1e2   :  { %v335_v58 = vadd.f32 %v334_v57, %v238_v54  ;;  %523 = vtanh.f32 %v340_v56 }
 0x1e3   :  { %v510_v60 = vpop.f32.mrf.mxu1 }
 0x1e4   :  { %525 = vtanh.f32 %v335_v58  ;;  %v350_v61 = vadd.f32 %v510_v60, %v253_v59 }
 0x1e5   :  { %v344_v63 = vpop.f32.mrf.mxu1 }
 0x1e6   :  { %v345_v0 = vadd.f32 %v344_v63, %v248_v62  ;;  %527 = vtanh.f32 %v350_v61 }
 0x1e8   :  { %529 = vtanh.f32 %v345_v0 }
 0x1ef   :  { %v524_v2 = vpop.eup %523 }
 0x1f0   :  { %v378_v7 = vmul.f32 %v524_v2, %v365_v4 }
 0x1f1   :  { %v526_v3 = vpop.eup %525 }
 0x1f2   :  { %v377_v5 = vmul.f32 %v526_v3, %v360_v1 }
 0x1f3   :  { %v528_v6 = vpop.eup %527 }
 0x1f4   :  { %v381_v11 = vadd.f32 %v378_v7, %v377_v5  ;;  %v380_v13 = vmul.f32 %v528_v6, %v375_v12 }
 0x1f5   :  { %v530_v8 = vpop.eup %529 }
 0x1f6   :  { %v379_v10 = vmul.f32 %v530_v8, %v370_v9 }
 0x1f8   :  { %v382_v14 = vadd.f32 %v381_v11, %v379_v10 }
 0x1fa   :  { %v383_v15 = vadd.f32 %v382_v14, %v380_v13 }
 0x1fc   :  { %v384_v16 = vrot.slane %v383_v15, 4 }
 0x1fe   :  { %v385_v17 = vadd.f32 %v384_v16, %v383_v15 }
 0x200   :  { %v386_v18 = vrot.slane %v385_v17, 2 }
 0x202   :  { %v387_v19 = vadd.f32 %v386_v18, %v385_v17 }
 0x204   :  { %v388_v20 = vrot.slane %v387_v19, 1 }
 0x206   :  { %v389_v22 = vadd.f32 %v388_v20, %v387_v19 }
 0x208   :  { %v391_v23 = vadd.f32 %v390_v21, %v389_v22 }
 0x20a   :  { %392 = vst [vmem:[#allocation3] sm:$0x1] %v391_v23 }
 0x20b   :  { %542 = shalt.err (!%p539_p4)
}
 0x20c   :  { %402 = dma.vmem_to_hbm [thread:$0]  %s400_s5, 16, %s756_s7, [#allocation4]  }
 0x20d   :  { %551 = dma.done.wait [#allocation4], 16  }
 0x20e   :  { %552 = vsyncadd [#allocation4], 4294967280 }
 0x20f   :  { %406 = vsyncpa [#allocation4], 1 }

</bundles_post_ra>
